<compile_context>
chip_gen: v7x
topology: tpu7x:2x2x1
jax: 0.10.0
libtpu: 0.0.40
codegen_flags: <defaults>
</compile_context>

<pallas_src>
import functools

import jax
import jax.numpy as jnp
from jax import lax
from jax.experimental import pallas as pl
from jax.experimental.pallas import tpu as pltpu

ALPHA = 0.25            # torchvision sigmoid_focal_loss defaults
GAMMA = 2.0             # exponent is exactly 2 -> q*q, no pow
LANES = 128
MAX_BLOCK_ROWS = 8192   # 8192*128*4B = 4 MiB f32 per input block
VMEM_LIMIT_BYTES = 40 * 1024 * 1024  # 2 inputs x 2 bufs x 4 MiB = 16 MiB + headroom


def _focal_kernel(x_ref, t_ref, out_ref, *, last_valid_rows, block_rows):
    """One (block_rows, 128) tile: elementwise focal loss -> one scalar partial sum."""
    x = x_ref[...].astype(jnp.float32)
    t = t_ref[...].astype(jnp.float32)

    # Shared exp(-|x|) feeds both sigmoid(x) and the stable BCE-with-logits term.
    e = jnp.exp(-jnp.abs(x))
    inv = pl.reciprocal(1.0 + e, approx=True)          # EUP vrcp (separate slot)
    p = jnp.where(x >= 0.0, inv, e * inv)              # == sigmoid(x)
    ce = jnp.maximum(x, 0.0) - x * t + jnp.log1p(e)    # BCE with logits, 'none'
    q = p + t - 2.0 * (p * t)                          # == 1 - p_t
    alpha_t = 0.75 - 0.5 * t                           # == 0.25*t + 0.75*(1-t)
    loss = (alpha_t * ce) * (q * q)                    # gamma == 2

    if last_valid_rows == block_rows:
        # rows divides evenly into blocks: no masking needed anywhere.
        out_ref[0, 0] = jnp.sum(loss)
    else:
        i = pl.program_id(0)
        last = pl.num_programs(0) - 1

        @pl.when(i != last)
        def _():  # full blocks: unmasked sum (no iota / compare / select cost)
            out_ref[0, 0] = jnp.sum(loss)

        @pl.when(i == last)
        def _():  # ragged last block: zero Pallas' garbage-padded rows
            row = lax.broadcasted_iota(jnp.int32, loss.shape, 0)
            out_ref[0, 0] = jnp.sum(jnp.where(row < last_valid_rows, loss, 0.0))


def _focal_loss_elems(x, t):
    """Plain-jnp per-element focal loss (used only for a <128-element tail)."""
    x = x.astype(jnp.float32)
    t = t.astype(jnp.float32)
    e = jnp.exp(-jnp.abs(x))
    p = jnp.where(x >= 0.0, 1.0 / (1.0 + e), e / (1.0 + e))
    ce = jnp.maximum(x, 0.0) - x * t + jnp.log1p(e)
    q = p + t - 2.0 * (p * t)
    alpha_t = 0.75 - 0.5 * t
    return (alpha_t * ce) * (q * q)


def sigmoid_focal_loss_pallas(inputs, targets):
    """Pallas TPU implementation of torchvision sigmoid_focal_loss(reduction='mean')."""
    assert inputs.shape == targets.shape
    n_valid = inputs.size

    # Flatten only (free bitcast); any dtype is accepted, the kernel casts in-register.
    x = inputs.reshape(-1)
    t = targets.reshape(-1)

    tail = n_valid % LANES
    n_aligned = n_valid - tail

    total = jnp.float32(0.0)

    if n_aligned > 0:
        rows = n_aligned // LANES
        # Lane-aligned prefix as a (rows, 128) slab. For the common lane-aligned
        # case this is a pure reshape (no copy at all).
        x2 = x[:n_aligned].reshape(rows, LANES)
        t2 = t[:n_aligned].reshape(rows, LANES)

        block_rows = rows if rows <= MAX_BLOCK_ROWS else MAX_BLOCK_ROWS
        num_blocks = pl.cdiv(rows, block_rows)
        # Valid rows in the (possibly ragged) last block -- a static Python int.
        last_valid_rows = rows - (num_blocks - 1) * block_rows

        partials = pl.pallas_call(
            functools.partial(
                _focal_kernel,
                last_valid_rows=last_valid_rows,
                block_rows=block_rows,
            ),
            out_shape=jax.ShapeDtypeStruct((num_blocks, 1), jnp.float32),
            grid=(num_blocks,),
            in_specs=[
                pl.BlockSpec((block_rows, LANES), lambda i: (i, 0)),
                pl.BlockSpec((block_rows, LANES), lambda i: (i, 0)),
            ],
            out_specs=pl.BlockSpec(
                (1, 1), lambda i: (i, 0), memory_space=pltpu.SMEM
            ),
            compiler_params=pltpu.CompilerParams(
                # No carried state across blocks -> fully parallel axis.
                dimension_semantics=("parallel",),
                # 8192-row blocks exceed v5e's 16 MiB scoped-VMEM default.
                vmem_limit_bytes=VMEM_LIMIT_BYTES,
            ),
        )(x2, t2)
        total = total + jnp.sum(partials)

    if tail:
        # <128 leftover elements: negligible work, done with plain jnp (no pad copy).
        total = total + jnp.sum(_focal_loss_elems(x[n_aligned:], t[n_aligned:]))

    # reduction='mean' over the original element count.
    return total / n_valid


def _reference(inputs, targets):
    x = inputs.astype(jnp.float32)
    t = targets.astype(jnp.float32)
    p = jax.nn.sigmoid(x)
    ce = jnp.maximum(x, 0.0) - x * t + jnp.log1p(jnp.exp(-jnp.abs(x)))
    p_t = p * t + (1.0 - p) * (1.0 - t)
    loss = ce * (1.0 - p_t) ** GAMMA
    alpha_t = ALPHA * t + (1.0 - ALPHA) * (1.0 - t)
    return jnp.mean(alpha_t * loss)


if __name__ == "__main__":
    key = jax.random.PRNGKey(0)
    k1, k2, k3, k4 = jax.random.split(key, 4)

    # detection-style logits: batch=2, channels(anchors*classes)=4, 16x16 spatial
    shape = (2, 4, 16, 16)
    inputs = jax.random.normal(k1, shape, dtype=jnp.float32)
    targets = (jax.random.uniform(k2, shape) > 0.5).astype(jnp.float32)

    out = sigmoid_focal_loss_pallas(inputs, targets)
    jax.block_until_ready(out)
    ref = _reference(inputs, targets)
    # approx EUP reciprocal introduces ~1e-4 relative error per element
    assert jnp.allclose(out, ref, rtol=2e-3, atol=1e-6), (out, ref)

    # Non lane-aligned size: exercises the aligned-prefix kernel + jnp tail path.
    shape2 = (3, 45)  # 135 elements -> 1 full row + 7-element tail
    inputs2 = jax.random.normal(k3, shape2, dtype=jnp.float32)
    targets2 = (jax.random.uniform(k4, shape2) > 0.5).astype(jnp.float32)
    out2 = sigmoid_focal_loss_pallas(inputs2, targets2)
    jax.block_until_ready(out2)
    ref2 = _reference(inputs2, targets2)
    assert jnp.allclose(out2, ref2, rtol=2e-3, atol=1e-6), (out2, ref2)

    print("KERNEL_OK")
</pallas_src>

<mosaic_0001>
module attributes {stable_mosaic.version = 11 : i64} {
  func.func @_focal_kernel(%arg0: i32, %arg1: memref<16x128xf32, #tpu.memory_space<vmem>>, %arg2: memref<16x128xf32, #tpu.memory_space<vmem>>, %arg3: memref<1x1xf32, #tpu.memory_space<smem>>) attributes {dimension_semantics = [#tpu.dimension_semantics<parallel>], iteration_bounds = array<i64: 1>, scalar_prefetch = 0 : i64, scratch_operands = 0 : i64, tpu.core_type = #tpu.core_type<tc>, window_params = [{transform_indices = @transform_0, window_bounds = array<i64: 16, 128>}, {transform_indices = @transform_1, window_bounds = array<i64: 16, 128>}, {transform_indices = @transform_2, window_bounds = array<i64: 1, 1>}]} {
    %c0 = arith.constant 0 : index
    %c0_0 = arith.constant 0 : index
    %0 = vector.load %arg1[%c0, %c0_0] : memref<16x128xf32, #tpu.memory_space<vmem>>, vector<16x128xf32>
    %c0_1 = arith.constant 0 : index
    %c0_2 = arith.constant 0 : index
    %1 = vector.load %arg2[%c0_1, %c0_2] : memref<16x128xf32, #tpu.memory_space<vmem>>, vector<16x128xf32>
    %2 = math.absf %0 : vector<16x128xf32>
    %cst = arith.constant 0.000000e+00 : f32
    %3 = vector.broadcast %cst : f32 to vector<16x128xf32>
    %4 = arith.subf %3, %2 : vector<16x128xf32>
    %5 = math.exp %4 : vector<16x128xf32>
    %cst_3 = arith.constant 1.000000e+00 : f32
    %6 = vector.broadcast %cst_3 : f32 to vector<16x128xf32>
    %7 = arith.addf %6, %5 : vector<16x128xf32>
    %8 = tpu.reciprocal %7 {approx = true} : vector<16x128xf32> -> vector<16x128xf32>
    %cst_4 = arith.constant 0.000000e+00 : f32
    %9 = vector.broadcast %cst_4 : f32 to vector<16x128xf32>
    %10 = arith.cmpf oge, %0, %9 : vector<16x128xf32>
    %11 = arith.mulf %5, %8 : vector<16x128xf32>
    %12 = arith.select %10, %8, %11 : vector<16x128xi1>, vector<16x128xf32>
    %cst_5 = arith.constant 0.000000e+00 : f32
    %13 = vector.broadcast %cst_5 : f32 to vector<16x128xf32>
    %14 = arith.maximumf %0, %13 : vector<16x128xf32>
    %15 = arith.mulf %0, %1 : vector<16x128xf32>
    %16 = arith.subf %14, %15 : vector<16x128xf32>
    %17 = math.log1p %5 : vector<16x128xf32>
    %18 = arith.addf %16, %17 : vector<16x128xf32>
    %19 = arith.addf %12, %1 : vector<16x128xf32>
    %20 = arith.mulf %12, %1 : vector<16x128xf32>
    %cst_6 = arith.constant 2.000000e+00 : f32
    %21 = vector.broadcast %cst_6 : f32 to vector<16x128xf32>
    %22 = arith.mulf %21, %20 : vector<16x128xf32>
    %23 = arith.subf %19, %22 : vector<16x128xf32>
    %cst_7 = arith.constant 5.000000e-01 : f32
    %24 = vector.broadcast %cst_7 : f32 to vector<16x128xf32>
    %25 = arith.mulf %24, %1 : vector<16x128xf32>
    %cst_8 = arith.constant 7.500000e-01 : f32
    %26 = vector.broadcast %cst_8 : f32 to vector<16x128xf32>
    %27 = arith.subf %26, %25 : vector<16x128xf32>
    %28 = arith.mulf %27, %18 : vector<16x128xf32>
    %29 = arith.mulf %23, %23 : vector<16x128xf32>
    %30 = arith.mulf %28, %29 : vector<16x128xf32>
    %31 = vector.shape_cast %30 : vector<16x128xf32> to vector<1x16x128xf32>
    %cst_9 = arith.constant dense<0.000000e+00> : vector<1xf32>
    %32 = vector.multi_reduction <add>, %31, %cst_9 [1, 2] : vector<1x16x128xf32> to vector<1xf32>
    %33 = vector.shape_cast %32 : vector<1xf32> to vector<1x1x1xf32>
    %34 = vector.extract %33[0, 0, 0] : f32 from vector<1x1x1xf32>
    %c0_10 = arith.constant 0 : index
    %c0_11 = arith.constant 0 : index
    %35 = memref.load %arg3[%c0_10, %c0_11] : memref<1x1xf32, #tpu.memory_space<smem>>
    memref.store %34, %arg3[%c0_10, %c0_11] : memref<1x1xf32, #tpu.memory_space<smem>>
    return
  }
  func.func @transform_0(%arg0: i32) -> (i32, i32) {
    %c0_i32 = arith.constant 0 : i32
    %c0_i32_0 = arith.constant 0 : i32
    return %arg0, %c0_i32 : i32, i32
  }
  func.func @transform_1(%arg0: i32) -> (i32, i32) {
    %c0_i32 = arith.constant 0 : i32
    %c0_i32_0 = arith.constant 0 : i32
    return %arg0, %c0_i32 : i32, i32
  }
  func.func @transform_2(%arg0: i32) -> (i32, i32) {
    %c0_i32 = arith.constant 0 : i32
    %c0_i32_0 = arith.constant 0 : i32
    return %arg0, %c0_i32 : i32, i32
  }
}

</mosaic_0001>

<bundles_post_ra>
// kernel: tpu_custom_call.1
= control target key start
LH: loop header
LB: loop body
LE: loop exit
PB: predicated region body
PF: predicated region fallthrough
CT: control target
= control target key end

     0   :  { %7 = vsyncpa [#allocation3], 0  ;;  %s275_s0 = inlined_call_operand.hbm [shape: f32[16,128], index: 0, kind: input, shape index: {}]   ;;  %s276_s1 = inlined_call_operand.hbm [shape: f32[16,128], index: 1, kind: input, shape index: {}]   ;;  %s277_s2 = inlined_call_operand.hbm [shape: f32[1,1], index: 2, kind: output, shape index: {}]  }
   0x1   :  { %8 = vsyncpa [#allocation6], 0 }
   0x2   :  { %9 = vsyncpa [#allocation4], 0  ;;  %s212_s9 = smov [#allocation2]   ;;  %s152_s13 = scalar_lea.hbm %s275_s0, 256 }
   0x3   :  { %s15_s10 = sshll.u32 %s212_s9, 4  ;;  %p153_p0 = scmp.ne.s32.totalorder %s275_s0, %s152_s13  ;;  %s16_s10 = int_to_ptr.vmem [resolvable:$true] %s15_s10 }
   0x4   :  { %p156_p1 = scmp.lt.u32.totalorder %s152_s13, %s275_s0 }
   0x6   :  { %p158_p2 = pnand %p156_p1, %p153_p0 }
   0x8   :  { %161 = shalt.err (!%p158_p2)
}
   0x9   :  { %s162_s18 = scalar_lea.vmem %s16_s10, 256  ;;  %p167_p4 = scmp.lt.s32.totalorder %s16_s10, %s16_s10 }
   0xa   :  { %p163_p3 = scmp.ne.s32.totalorder %s16_s10, %s162_s18  ;;  %p168_p5 = scmp.lt.s32.totalorder %s162_s18, %s162_s18 }
   0xc   :  { %p169_p6 = por %p168_p5, %p167_p4 }
   0xe   :  { %p170_p7 = pnand %p169_p6, %p163_p3 }
  0x10   :  { %173 = shalt.err (!%p170_p7)
}
  0x11   :  { %s213_s19 = smov 128   ;;  %s214_s20 = smov 8  }
  0x12   :  { %21 = dma.hbm_to_vmem [thread:$0]  %s275_s0, 256, %s16_s10, [#allocation3], %s213_s19, %s213_s19, %s214_s20  }
  0x13   :  { %s215_s23 = smov [#allocation5]   ;;  %s174_s27 = scalar_lea.hbm %s276_s1, 256 }
  0x14   :  { %s27_s24 = sshll.u32 %s215_s23, 4  ;;  %p175_p8 = scmp.ne.s32.totalorder %s276_s1, %s174_s27  ;;  %s28_s24 = int_to_ptr.vmem [resolvable:$true] %s27_s24 }
  0x15   :  { %p178_p9 = scmp.lt.u32.totalorder %s174_s27, %s276_s1 }
  0x17   :  { %p180_p10 = pnand %p178_p9, %p175_p8 }
  0x19   :  { %183 = shalt.err (!%p180_p10)
}
  0x1a   :  { %s184_s4 = scalar_lea.vmem %s28_s24, 256  ;;  %p189_p12 = scmp.lt.s32.totalorder %s28_s24, %s28_s24 }
  0x1b   :  { %p185_p11 = scmp.ne.s32.totalorder %s28_s24, %s184_s4  ;;  %p190_p13 = scmp.lt.s32.totalorder %s184_s4, %s184_s4 }
  0x1d   :  { %p191_p0 = por %p190_p13, %p189_p12 }
  0x1f   :  { %p192_p1 = pnand %p191_p0, %p185_p11 }
  0x21   :  { %195 = shalt.err (!%p192_p1)
}
  0x22   :  { %33 = dma.hbm_to_vmem [thread:$0]  %s276_s1, 256, %s28_s24, [#allocation6], %s213_s19, %s213_s19, %s214_s20  }
  0x23   :  { %206 = dma.done.wait [#allocation3], 256  }
  0x24   :  { %207 = vsyncadd [#allocation3], 4294967040 }
  0x25   :  { %208 = dma.done.wait [#allocation6], 256  }
  0x26   :  { %209 = vsyncadd [#allocation6], 4294967040  ;;  %v40_v0 = vld [vmem:[#allocation2] sm:$0xff]  ;;  %v41_v1 = vld [vmem:[#allocation2 + $0x8] sm:$0xff]  ;;  %s196_s8 = scalar_lea.hbm %s277_s2, 16 }
  0x27   :  { %v44_v2 = vand.u32 2147483647, %v40_v0  ;;  %v45_v3 = vand.u32 2147483647, %v41_v1  ;;  %v42_v13 = vld [vmem:[#allocation5] sm:$0xff]  ;;  %v43_v15 = vld [vmem:[#allocation5 + $0x8] sm:$0xff]  ;;  %p197_p2 = scmp.ne.s32.totalorder %s277_s2, %s196_s8  ;;  %p200_p3 = scmp.lt.u32.totalorder %s196_s8, %s277_s2 }
  0x28   :  { %v62_v16 = vmax.f32 %v40_v0, 0.0  ;;  %v64_v17 = vmul.f32 %v42_v13, %v40_v0  ;;  %v63_v19 = vmax.f32 %v41_v1, 0.0  ;;  %v65_v20 = vmul.f32 %v43_v15, %v41_v1 }
  0x29   :  { %v46_v4 = vsub.f32 0.0, %v44_v2  ;;  %v47_v5 = vsub.f32 0.0, %v45_v3  ;;  %v96_v24 = vmul.f32 0.5, %v42_v13  ;;  %vm56_vm0 = vcmp.ge.f32.partialorder %v40_v0, 0.0  ;;  %p202_p4 = pnand %p200_p3, %p197_p2 }
  0x2a   :  { %vm57_vm1 = vcmp.ge.f32.partialorder %v41_v1, 0.0  ;;  %v66_v28 = vsub.f32 %v62_v16, %v64_v17  ;;  %v97_v30 = vmul.f32 0.5, %v43_v15  ;;  %v67_v33 = vsub.f32 %v63_v19, %v65_v20 }
  0x2b   :  { %v48_v6 = vmul.f32 1.442695, %v46_v4  ;;  %v50_v7 = vmul.f32 1.442695, %v47_v5  ;;  %v98_v39 = vsub.f32 0.75, %v96_v24 }
  0x2c   :  { %v99_v47 = vsub.f32 0.75, %v97_v30 }
  0x2d   :  { %140 = vpow2.f32 %v48_v6 }
  0x2e   :  { %142 = vpow2.f32 %v50_v7 }
  0x37   :  { %v141_v8 = vpop.eup %140 }
  0x38   :  { %v143_v9 = vpop.eup %142  ;;  %v52_v10 = vadd.f32 1.0, %v141_v8  ;;  %v71_v12 = vmul.f32 -0.5, %v141_v8  ;;  %v74_v21 = vand.u32 2147483647, %v141_v8 }
  0x39   :  { %v53_v11 = vadd.f32 1.0, %v143_v9  ;;  %v80_v14 = vmul.f32 -0.5, %v143_v9  ;;  %v83_v23 = vand.u32 2147483647, %v143_v9 }
  0x3a   :  { %144 = vrcp.f32 %v52_v10  ;;  %v72_v18 = vadd.f32 1.0, %v71_v12  ;;  %vm256_vm2 = vcmp.lt.f32.partialorder %v74_v21, 0.0004427343 }
  0x3b   :  { %146 = vrcp.f32 %v53_v11  ;;  %v81_v22 = vadd.f32 1.0, %v80_v14  ;;  %vm84_vm3 = vcmp.lt.f32.partialorder %v83_v23, 0.0004427343 }
  0x3c   :  { %148 = vlog2.f32 %v52_v10  ;;  %v73_v29 = vmul.f32 %v141_v8, %v72_v18 }
  0x3d   :  { %150 = vlog2.f32 %v53_v11  ;;  %v82_v35 = vmul.f32 %v143_v9, %v81_v22 }
  0x44   :  { %v145_v25 = vpop.eup %144 }
  0x45   :  { %v147_v26 = vpop.eup %146  ;;  %v58_v27 = vmul.f32 %v145_v25, %v141_v8 }
  0x46   :  { %v149_v31 = vpop.eup %148  ;;  %v59_v32 = vmul.f32 %v147_v26, %v143_v9 }
  0x47   :  { %v151_v36 = vpop.eup %150  ;;  %v60_v37 = vsel %vm56_vm0, %v145_v25, %v58_v27  ;;  %v70_v38 = vmul.f32 0.6931472, %v149_v31 }
  0x48   :  { %v61_v40 = vsel %vm57_vm1, %v147_v26, %v59_v32  ;;  %v79_v41 = vmul.f32 0.6931472, %v151_v36  ;;  %v88_v42 = vadd.f32 %v60_v37, %v42_v13  ;;  %v90_v43 = vmul.f32 %v60_v37, %v42_v13 }
  0x49   :  { %v76_v44 = vsel %vm256_vm2, %v73_v29, %v70_v38  ;;  %v89_v45 = vadd.f32 %v61_v40, %v43_v15  ;;  %v91_v46 = vmul.f32 %v61_v40, %v43_v15 }
  0x4a   :  { %v85_v48 = vsel %vm84_vm3, %v82_v35, %v79_v41  ;;  %v86_v49 = vadd.f32 %v76_v44, %v66_v28  ;;  %v92_v50 = vmul.f32 2.0, %v90_v43 }
  0x4b   :  { %v87_v51 = vadd.f32 %v85_v48, %v67_v33  ;;  %v93_v52 = vmul.f32 2.0, %v91_v46 }
  0x4c   :  { %v94_v53 = vsub.f32 %v88_v42, %v92_v50  ;;  %v100_v54 = vmul.f32 %v98_v39, %v86_v49 }
  0x4d   :  { %v95_v55 = vsub.f32 %v89_v45, %v93_v52  ;;  %v101_v56 = vmul.f32 %v99_v47, %v87_v51 }
  0x4e   :  { %v102_v57 = vmul.f32 %v94_v53, %v94_v53 }
  0x4f   :  { %v103_v58 = vmul.f32 %v95_v55, %v95_v55 }
  0x50   :  { %v104_v59 = vmul.f32 %v102_v57, %v100_v54 }
  0x51   :  { %v105_v60 = vmul.f32 %v103_v58, %v101_v56 }
  0x53   :  { %v106_v61 = vadd.f32 %v105_v60, %v104_v59 }
  0x55   :  { %107 = vadd.xlane.f32.xlu0 %v106_v61 }
  0xe2   :  { %v108_v62 = vpop.xlane.xlu0 %107 }
  0xe3   :  { %v109_v63 = vrot.slane %v108_v62, 4 }
  0xe5   :  { %v110_v0 = vadd.f32 %v109_v63, %v108_v62 }
  0xe7   :  { %v111_v1 = vrot.slane %v110_v0, 2 }
  0xe9   :  { %v112_v2 = vadd.f32 %v111_v1, %v110_v0 }
  0xeb   :  { %v113_v3 = vrot.slane %v112_v2, 1 }
  0xed   :  { %v114_v4 = vadd.f32 %v113_v3, %v112_v2 }
  0xef   :  { %133 = vpush %v114_v4 }
 0x120   :  { %s134_s1 = spop %133 }
 0x121   :  { %117 = sst [smem:[#allocation7]] %s134_s1 }
 0x122   :  { %205 = shalt.err (!%p202_p4)
}
 0x123   :  { %s216_s13 = smov [#allocation7]  }
 0x124   :  { %125 = dma.smem_to_hbm %s216_s13, 16, %s277_s2, [#allocation4]  }
 0x125   :  { %210 = dma.done.wait [#allocation4], 16  }
 0x126   :  { %211 = vsyncadd [#allocation4], 4294967280 }
 0x127   :  { %129 = sfence }
 0x128   :  { %130 = vsyncpa [#allocation3], 1 }
 0x129   :  { %131 = vsyncpa [#allocation6], 1 }
 0x12a   :  { %132 = vsyncpa [#allocation4], 1 }

</bundles_post_ra>
